<compile_context>
chip_gen: v7x
topology: tpu7x:2x2x1
jax: 0.10.0
libtpu: 0.0.40
codegen_flags: <defaults>
</compile_context>

<pallas_src>
import functools

import jax
import jax.numpy as jnp
from jax.experimental import pallas as pl
from jax.experimental.pallas import tpu as pltpu


def _attention_kernel(x_ref, wqkv_ref, bqkv_ref, wo_ref, bo_ref, o_ref, *,
                      heads, dim_head, scale, compute_dtype):
    """Fused multi-head attention for one batch element.

    x_ref    : (1, S, D)        activations (compute_dtype)
    wqkv_ref : (D, 3*inner)     [Wq^T | Wk^T | Wv^T]  (compute_dtype, resident)
    bqkv_ref : (1, 3*inner)     [bq | bk | bv]        (f32)
    wo_ref   : (inner, D)       Wo^T                  (compute_dtype, resident)
    bo_ref   : (1, D)           bo                    (f32)
    o_ref    : (1, S, D)        output (f32)
    """
    inner = heads * dim_head

    xb = x_ref[0]                                            # (S, D)

    # Fused QKV projection: one big K=D matmul for all heads, f32 accumulate.
    qkv = jnp.dot(xb, wqkv_ref[...],
                  preferred_element_type=jnp.float32) + bqkv_ref[...]  # (S, 3*inner)

    # Fold the softmax scale into q (S x dh multiplies instead of S x S).
    q = (qkv[:, :inner] * scale).astype(compute_dtype)
    k = qkv[:, inner:2 * inner].astype(compute_dtype)
    v = qkv[:, 2 * inner:].astype(compute_dtype)

    ctx_heads = []
    for h in range(heads):                                   # static, small
        sl = slice(h * dim_head, (h + 1) * dim_head)
        qh, kh, vh = q[:, sl], k[:, sl], v[:, sl]

        dots = jnp.dot(qh, kh.T, preferred_element_type=jnp.float32)   # (S, S)
        m = jnp.max(dots, axis=-1, keepdims=True)
        p = jnp.exp(dots - m)                                           # f32
        l = jnp.sum(p, axis=-1, keepdims=True)

        # Deferred normalization: (p @ v) * 1/l  (EUP reciprocal, ~free slot).
        ctx_h = jnp.dot(p.astype(compute_dtype), vh,
                        preferred_element_type=jnp.float32)             # (S, dh)
        ctx_heads.append(ctx_h * pl.reciprocal(l, approx=True))

    ctx = jnp.concatenate(ctx_heads, axis=-1).astype(compute_dtype)     # (S, inner)

    # Single fused output projection + single lane-dense store.
    out = jnp.dot(ctx, wo_ref[...],
                  preferred_element_type=jnp.float32) + bo_ref[...]     # (S, D)
    o_ref[0] = out.astype(o_ref.dtype)


def attention_forward(x, params, *, heads, dim_head,
                      compute_dtype=jnp.bfloat16):
    """x: (S, B, D) float32. params are torch nn.Linear-layout weights."""
    S, B, D = x.shape
    dh = dim_head
    inner = heads * dh
    assert D == heads * dh, "module semantics require dim == heads * dim_head"
    wq, bq, wk, bk, wv, bv, wo, bo = params
    scale = dh ** (-0.5)

    # Fused, MXU-ready operands (torch Linear stores W as (out_features, in)).
    wqkv = jnp.concatenate([wq.T, wk.T, wv.T], axis=1).astype(compute_dtype)  # (D, 3*inner)
    bqkv = jnp.concatenate([bq, bk, bv]).reshape(1, 3 * inner).astype(jnp.float32)
    wo_t = wo.T.astype(compute_dtype)                                         # (inner, D)
    bo_2d = bo.reshape(1, D).astype(jnp.float32)

    # (B, S, D) view, cast before transpose to halve the bytes moved.
    x_bsd = jnp.transpose(x.astype(compute_dtype), (1, 0, 2))

    kernel = functools.partial(_attention_kernel, heads=heads, dim_head=dh,
                               scale=scale, compute_dtype=compute_dtype)

    # Constant index_maps keep the weight blocks VMEM-resident across the grid.
    out_bsd = pl.pallas_call(
        kernel,
        out_shape=jax.ShapeDtypeStruct((B, S, D), jnp.float32),
        grid=(B,),
        in_specs=[
            pl.BlockSpec((1, S, D), lambda b: (b, 0, 0)),        # x
            pl.BlockSpec((D, 3 * inner), lambda b: (0, 0)),      # fused QKV weight
            pl.BlockSpec((1, 3 * inner), lambda b: (0, 0)),      # fused QKV bias
            pl.BlockSpec((inner, D), lambda b: (0, 0)),          # Wo^T
            pl.BlockSpec((1, D), lambda b: (0, 0)),              # bo
        ],
        out_specs=pl.BlockSpec((1, S, D), lambda b: (b, 0, 0)),
        compiler_params=pltpu.CompilerParams(
            dimension_semantics=("parallel",)),
    )(x_bsd, wqkv, bqkv, wo_t, bo_2d)

    return jnp.transpose(out_bsd, (1, 0, 2))        # back to (S, B, D)


def attention_reference(x, params, *, heads, dim_head):
    """Pure-JAX transcription of the PyTorch forward (f32, for validation)."""
    S, B, D = x.shape
    dh = dim_head
    wq, bq, wk, bk, wv, bv, wo, bo = params
    scale = dh ** (-0.5)

    q = x @ wq.T + bq
    k = x @ wk.T + bk
    v = x @ wv.T + bv
    qh = q.reshape(S, B * heads, dh).transpose(1, 0, 2)        # (BH, S, dh)
    kh = k.reshape(S, B * heads, dh).transpose(1, 2, 0)        # (BH, dh, S)
    vh = v.reshape(S, B * heads, dh).transpose(1, 0, 2)        # (BH, S, dh)
    dots = jnp.einsum('bij,bjk->bik', qh, kh) * scale
    attn = jax.nn.softmax(dots, axis=-1)
    out = jnp.einsum('bij,bjk->bik', attn, vh)                 # (BH, S, dh)
    out = out.transpose(1, 0, 2).reshape(S, B, D)
    return out @ wo.T + bo


if __name__ == "__main__":
    # Small shapes consistent with the module: dim == heads * dim_head.
    S, B = 8, 2
    heads, dim_head = 2, 16
    dim = heads * dim_head            # 32
    inner = heads * dim_head

    key = jax.random.PRNGKey(0)
    ks = jax.random.split(key, 9)
    x = jax.random.normal(ks[0], (S, B, dim), dtype=jnp.float32)

    def lin(kw, kb, out_f, in_f):
        w = jax.random.normal(kw, (out_f, in_f), dtype=jnp.float32) * 0.05
        b = jax.random.normal(kb, (out_f,), dtype=jnp.float32) * 0.05
        return w, b

    wq, bq = lin(ks[1], ks[2], inner, dim)
    wk, bk = lin(ks[3], ks[4], inner, dim)
    wv, bv = lin(ks[5], ks[6], inner, dim)
    wo, bo = lin(ks[7], ks[8], dim, inner)
    params = (wq, bq, wk, bk, wv, bv, wo, bo)

    ref = attention_reference(x, params, heads=heads, dim_head=dim_head)

    # f32 compute path (tight tolerance; only the approx reciprocal differs).
    out_f32 = attention_forward(x, params, heads=heads, dim_head=dim_head,
                                compute_dtype=jnp.float32)
    out_f32 = jax.block_until_ready(out_f32)
    assert out_f32.shape == (S, B, dim)
    assert jnp.allclose(out_f32, ref, atol=2e-3, rtol=2e-3), "f32 mismatch vs reference"

    # bf16 MXU-operand path (default; relaxed tolerance for bf16 operands).
    out_bf16 = attention_forward(x, params, heads=heads, dim_head=dim_head,
                                 compute_dtype=jnp.bfloat16)
    out_bf16 = jax.block_until_ready(out_bf16)
    assert out_bf16.shape == (S, B, dim)
    assert jnp.allclose(out_bf16, ref, atol=2e-2, rtol=2e-2), "bf16 mismatch vs reference"

    print("KERNEL_OK")
</pallas_src>

<mosaic_0001>
module attributes {stable_mosaic.version = 11 : i64} {
  func.func @_attention_kernel(%arg0: i32, %arg1: memref<1x8x32xf32, #tpu.memory_space<vmem>>, %arg2: memref<32x96xf32, #tpu.memory_space<vmem>>, %arg3: memref<1x96xf32, #tpu.memory_space<vmem>>, %arg4: memref<32x32xf32, #tpu.memory_space<vmem>>, %arg5: memref<1x32xf32, #tpu.memory_space<vmem>>, %arg6: memref<1x8x32xf32, #tpu.memory_space<vmem>>) attributes {dimension_semantics = [#tpu.dimension_semantics<parallel>], iteration_bounds = array<i64: 2>, scalar_prefetch = 0 : i64, scratch_operands = 0 : i64, tpu.core_type = #tpu.core_type<tc>, window_params = [{transform_indices = @transform_0, window_bounds = array<i64: 1, 8, 32>}, {pipeline_mode = #tpu.pipeline_mode<synchronous>, transform_indices = @transform_1, window_bounds = array<i64: 32, 96>}, {pipeline_mode = #tpu.pipeline_mode<synchronous>, transform_indices = @transform_2, window_bounds = array<i64: 1, 96>}, {pipeline_mode = #tpu.pipeline_mode<synchronous>, transform_indices = @transform_3, window_bounds = array<i64: 32, 32>}, {pipeline_mode = #tpu.pipeline_mode<synchronous>, transform_indices = @transform_4, window_bounds = array<i64: 1, 32>}, {transform_indices = @transform_5, window_bounds = array<i64: 1, 8, 32>}]} {
    %c0 = arith.constant 0 : index
    %c0_0 = arith.constant 0 : index
    %c0_1 = arith.constant 0 : index
    %0 = vector.load %arg1[%c0, %c0_0, %c0_1] : memref<1x8x32xf32, #tpu.memory_space<vmem>>, vector<1x8x32xf32>
    %1 = vector.shape_cast %0 : vector<1x8x32xf32> to vector<8x32xf32>
    %c0_2 = arith.constant 0 : index
    %c0_3 = arith.constant 0 : index
    %2 = vector.load %arg2[%c0_2, %c0_3] : memref<32x96xf32, #tpu.memory_space<vmem>>, vector<32x96xf32>
    %cst = arith.constant dense<0.000000e+00> : vector<8x96xf32>
    %3 = tpu.matmul %1, %2, %cst {dimension_numbers = #tpu.dot_dimension_numbers<[1], [0], [0], [1], [0, 0, 1, 1], [], []>} : vector<8x32xf32>, vector<32x96xf32>, vector<8x96xf32> -> vector<8x96xf32>
    %c0_4 = arith.constant 0 : index
    %c0_5 = arith.constant 0 : index
    %4 = vector.load %arg3[%c0_4, %c0_5] : memref<1x96xf32, #tpu.memory_space<vmem>>, vector<1x96xf32>
    %5 = vector.broadcast %4 : vector<1x96xf32> to vector<8x96xf32>
    %6 = arith.addf %3, %5 : vector<8x96xf32>
    %7 = vector.extract_strided_slice %6 {offsets = [0, 0], sizes = [8, 32], strides = [1, 1]} : vector<8x96xf32> to vector<8x32xf32>
    %cst_6 = arith.constant 2.500000e-01 : f32
    %8 = vector.broadcast %cst_6 : f32 to vector<8x32xf32>
    %9 = arith.mulf %7, %8 : vector<8x32xf32>
    %10 = vector.extract_strided_slice %6 {offsets = [0, 32], sizes = [8, 32], strides = [1, 1]} : vector<8x96xf32> to vector<8x32xf32>
    %11 = vector.extract_strided_slice %6 {offsets = [0, 64], sizes = [8, 32], strides = [1, 1]} : vector<8x96xf32> to vector<8x32xf32>
    %12 = vector.extract_strided_slice %9 {offsets = [0, 0], sizes = [8, 16], strides = [1, 1]} : vector<8x32xf32> to vector<8x16xf32>
    %13 = vector.extract_strided_slice %10 {offsets = [0, 0], sizes = [8, 16], strides = [1, 1]} : vector<8x32xf32> to vector<8x16xf32>
    %14 = vector.extract_strided_slice %11 {offsets = [0, 0], sizes = [8, 16], strides = [1, 1]} : vector<8x32xf32> to vector<8x16xf32>
    %15 = tpu.transpose %13, [1, 0] : vector<8x16xf32> -> vector<16x8xf32>
    %cst_7 = arith.constant dense<0.000000e+00> : vector<8x8xf32>
    %16 = tpu.matmul %12, %15, %cst_7 {dimension_numbers = #tpu.dot_dimension_numbers<[1], [0], [0], [1], [0, 0, 1, 1], [], []>} : vector<8x16xf32>, vector<16x8xf32>, vector<8x8xf32> -> vector<8x8xf32>
    %cst_8 = arith.constant dense<0xFF800000> : vector<8xf32>
    %17 = vector.multi_reduction <maximumf>, %16, %cst_8 [1] : vector<8x8xf32> to vector<8xf32>
    %18 = vector.shape_cast %17 : vector<8xf32> to vector<8x1xf32>
    %19 = vector.broadcast %18 : vector<8x1xf32> to vector<8x8xf32>
    %20 = arith.subf %16, %19 : vector<8x8xf32>
    %21 = math.exp %20 : vector<8x8xf32>
    %cst_9 = arith.constant dense<0.000000e+00> : vector<8xf32>
    %22 = vector.multi_reduction <add>, %21, %cst_9 [1] : vector<8x8xf32> to vector<8xf32>
    %23 = vector.shape_cast %22 : vector<8xf32> to vector<8x1xf32>
    %cst_10 = arith.constant dense<0.000000e+00> : vector<8x16xf32>
    %24 = tpu.matmul %21, %14, %cst_10 {dimension_numbers = #tpu.dot_dimension_numbers<[1], [0], [0], [1], [0, 0, 1, 1], [], []>} : vector<8x8xf32>, vector<8x16xf32>, vector<8x16xf32> -> vector<8x16xf32>
    %25 = tpu.reciprocal %23 {approx = true} : vector<8x1xf32> -> vector<8x1xf32>
    %26 = vector.broadcast %25 : vector<8x1xf32> to vector<8x16xf32>
    %27 = arith.mulf %24, %26 : vector<8x16xf32>
    %28 = vector.extract_strided_slice %9 {offsets = [0, 16], sizes = [8, 16], strides = [1, 1]} : vector<8x32xf32> to vector<8x16xf32>
    %29 = vector.extract_strided_slice %10 {offsets = [0, 16], sizes = [8, 16], strides = [1, 1]} : vector<8x32xf32> to vector<8x16xf32>
    %30 = vector.extract_strided_slice %11 {offsets = [0, 16], sizes = [8, 16], strides = [1, 1]} : vector<8x32xf32> to vector<8x16xf32>
    %31 = tpu.transpose %29, [1, 0] : vector<8x16xf32> -> vector<16x8xf32>
    %cst_11 = arith.constant dense<0.000000e+00> : vector<8x8xf32>
    %32 = tpu.matmul %28, %31, %cst_11 {dimension_numbers = #tpu.dot_dimension_numbers<[1], [0], [0], [1], [0, 0, 1, 1], [], []>} : vector<8x16xf32>, vector<16x8xf32>, vector<8x8xf32> -> vector<8x8xf32>
    %cst_12 = arith.constant dense<0xFF800000> : vector<8xf32>
    %33 = vector.multi_reduction <maximumf>, %32, %cst_12 [1] : vector<8x8xf32> to vector<8xf32>
    %34 = vector.shape_cast %33 : vector<8xf32> to vector<8x1xf32>
    %35 = vector.broadcast %34 : vector<8x1xf32> to vector<8x8xf32>
    %36 = arith.subf %32, %35 : vector<8x8xf32>
    %37 = math.exp %36 : vector<8x8xf32>
    %cst_13 = arith.constant dense<0.000000e+00> : vector<8xf32>
    %38 = vector.multi_reduction <add>, %37, %cst_13 [1] : vector<8x8xf32> to vector<8xf32>
    %39 = vector.shape_cast %38 : vector<8xf32> to vector<8x1xf32>
    %cst_14 = arith.constant dense<0.000000e+00> : vector<8x16xf32>
    %40 = tpu.matmul %37, %30, %cst_14 {dimension_numbers = #tpu.dot_dimension_numbers<[1], [0], [0], [1], [0, 0, 1, 1], [], []>} : vector<8x8xf32>, vector<8x16xf32>, vector<8x16xf32> -> vector<8x16xf32>
    %41 = tpu.reciprocal %39 {approx = true} : vector<8x1xf32> -> vector<8x1xf32>
    %42 = vector.broadcast %41 : vector<8x1xf32> to vector<8x16xf32>
    %43 = arith.mulf %40, %42 : vector<8x16xf32>
    %44 = tpu.concatenate %27, %43 in 1 : vector<8x16xf32>, vector<8x16xf32> -> vector<8x32xf32>
    %c0_15 = arith.constant 0 : index
    %c0_16 = arith.constant 0 : index
    %45 = vector.load %arg4[%c0_15, %c0_16] : memref<32x32xf32, #tpu.memory_space<vmem>>, vector<32x32xf32>
    %cst_17 = arith.constant dense<0.000000e+00> : vector<8x32xf32>
    %46 = tpu.matmul %44, %45, %cst_17 {dimension_numbers = #tpu.dot_dimension_numbers<[1], [0], [0], [1], [0, 0, 1, 1], [], []>} : vector<8x32xf32>, vector<32x32xf32>, vector<8x32xf32> -> vector<8x32xf32>
    %c0_18 = arith.constant 0 : index
    %c0_19 = arith.constant 0 : index
    %47 = vector.load %arg5[%c0_18, %c0_19] : memref<1x32xf32, #tpu.memory_space<vmem>>, vector<1x32xf32>
    %48 = vector.broadcast %47 : vector<1x32xf32> to vector<8x32xf32>
    %49 = arith.addf %46, %48 : vector<8x32xf32>
    %c0_20 = arith.constant 0 : index
    %c0_21 = arith.constant 0 : index
    %c0_22 = arith.constant 0 : index
    %50 = vector.load %arg6[%c0_20, %c0_21, %c0_22] : memref<1x8x32xf32, #tpu.memory_space<vmem>>, vector<1x8x32xf32>
    %51 = vector.shape_cast %50 : vector<1x8x32xf32> to vector<8x32xf32>
    %52 = vector.shape_cast %49 : vector<8x32xf32> to vector<1x8x32xf32>
    tpu.vector_store %arg6[%c0_20, %c0_21, %c0_22], %52 {strides = array<i32>} : memref<1x8x32xf32, #tpu.memory_space<vmem>>, vector<1x8x32xf32>,
    return
  }
  func.func @transform_0(%arg0: i32) -> (i32, i32, i32) {
    %c0_i32 = arith.constant 0 : i32
    %c0_i32_0 = arith.constant 0 : i32
    %c0_i32_1 = arith.constant 0 : i32
    return %arg0, %c0_i32, %c0_i32_0 : i32, i32, i32
  }
  func.func @transform_1(%arg0: i32) -> (i32, i32) {
    %c0_i32 = arith.constant 0 : i32
    %c0_i32_0 = arith.constant 0 : i32
    %c0_i32_1 = arith.constant 0 : i32
    return %c0_i32, %c0_i32_0 : i32, i32
  }
  func.func @transform_2(%arg0: i32) -> (i32, i32) {
    %c0_i32 = arith.constant 0 : i32
    %c0_i32_0 = arith.constant 0 : i32
    %c0_i32_1 = arith.constant 0 : i32
    return %c0_i32, %c0_i32_0 : i32, i32
  }
  func.func @transform_3(%arg0: i32) -> (i32, i32) {
    %c0_i32 = arith.constant 0 : i32
    %c0_i32_0 = arith.constant 0 : i32
    %c0_i32_1 = arith.constant 0 : i32
    return %c0_i32, %c0_i32_0 : i32, i32
  }
  func.func @transform_4(%arg0: i32) -> (i32, i32) {
    %c0_i32 = arith.constant 0 : i32
    %c0_i32_0 = arith.constant 0 : i32
    %c0_i32_1 = arith.constant 0 : i32
    return %c0_i32, %c0_i32_0 : i32, i32
  }
  func.func @transform_5(%arg0: i32) -> (i32, i32, i32) {
    %c0_i32 = arith.constant 0 : i32
    %c0_i32_0 = arith.constant 0 : i32
    %c0_i32_1 = arith.constant 0 : i32
    return %arg0, %c0_i32, %c0_i32_0 : i32, i32, i32
  }
}

</mosaic_0001>

<bundles_post_ra>
// kernel: tpu_custom_call.1
= control target key start
LH: loop header
LB: loop body
LE: loop exit
PB: predicated region body
PF: predicated region fallthrough
CT: control target
= control target key end

     0   :  { %10 = vsyncpa [#allocation3], 0  ;;  %s1531_s0 = inlined_call_operand.hbm [shape: f32[2,8,32], index: 0, kind: input, shape index: {}]   ;;  %s1532_s1 = inlined_call_operand.hbm [shape: f32[32,96], index: 1, kind: input, shape index: {}]   ;;  %s1533_s2 = inlined_call_operand.vmem [shape: f32[1,96], index: 2, kind: input, shape index: {}]   ;;  %s1534_s3 = inlined_call_operand.hbm [shape: f32[32,32], index: 3, kind: input, shape index: {}]   ;;  %s1535_s4 = inlined_call_operand.vmem [shape: f32[1,32], index: 4, kind: input, shape index: {}]   ;;  %s1536_s5 = inlined_call_operand.hbm [shape: f32[2,8,32], index: 5, kind: output, shape index: {}]  }
   0x1   :  { %12 = vsyncpa [#allocation3 + $0x1], 0 }
   0x2   :  { %13 = vsyncpa [#allocation6], 0 }
   0x3   :  { %14 = vsyncpa [#allocation4], 0 }
   0x4   :  { %16 = vsyncpa [#allocation4 + $0x1], 0  ;;  %s1268_s18 = smov 0   ;;  %s1270_s19 = smov 0  }
   0x5   :  { %s1272_s20 = smov 0   ;;  %s1274_s21 = smov 0  }
   0x6 LB: > { %s1289_s22 = sadd.s32 4294967295, %s1221_s21   ;;  %s881_s23 = sadd.s32 4294967294, %s1221_s21   ;;  %s1221_s21 = sphi %s1274_s21, %s1556_s21   ;;  %s1217_s20 = sphi %s1272_s20, %s1555_s20   ;;  %s1213_s19 = sphi %s1270_s19, %s1554_s19   ;;  %s1209_s18 = sphi %s1268_s18, %s1553_s18  }
   0x7   : > { %p42_p0 = scmp.ne.s32.totalorder %s1213_s19, %s1209_s18  ;;  %p1537_p1 = scmp.eq.s32.totalorder %s1289_s22, 0 }
   0x8   : > { %p156_p3 = scmp.eq.s32.totalorder %s881_s23, 1  ;;  %p882_p5 = scmp.ge.s32.totalorder %s1221_s21, 1 }
   0x9   : > { %p1298_p4 = por %p1537_p1, %p42_p0  ;;  %p163_p7 = scmp.lt.s32.totalorder %s1221_s21, 3 }
   0xa   : > { %p1303_p6 = por %p156_p3, %p42_p0  ;;  %s1223_s27 = smov [#allocation5]  }
   0xb   : > { %s1540_s24 = scalar_select %p1298_p4, 1, 0 }
   0xc   : > { %s1541_s25 = scalar_select %p1303_p6, 1, 0 }
   0xd   : > { %p1308_p8 = pnand %p882_p5, %p163_p7  ;;  %s175_s28 = sshll.u32 %s1223_s27, 4  ;;  %s1312_s28 = int_to_ptr.vmem [resolvable:$true] %s175_s28 }
   0xe   : > { %s1224_s30 = smov [#allocation7]   ;;  %s1065_s9 = scalar_lea.hbm %s1532_s1, 512 }
   0xf   : > { %p991_p9 = pneg %p1308_p8  ;;  %s191_s6 = sshll.u32 %s1224_s30, 4  ;;  %s1323_s6 = int_to_ptr.vmem [resolvable:$true] %s191_s6 }
  0x10   : > { %p1066_p12 = scmp.ne.s32.totalorder %s1532_s1, %s1065_s9  ;;  %p1072_p5 = scmp.lt.u32.totalorder %s1065_s9, %s1532_s1 }
  0x11   : > { %p1319_p11 = pnand %p991_p9, %p1537_p1 }
  0x13   : > { %p1067_p13 = pneg %p1319_p11 }
  0x15   : > { %p1068_p0 = pnand %p1067_p13, %p1066_p12 }
  0x17   : > { %p1069_p3 = pneg %p1068_p0 }
  0x19   : > { %p1074_p7 = pnand %p1072_p5, %p1069_p3 }
  0x1b   : > { %1077 = shalt.err (!%p1074_p7)
}
  0x1c   : > { %s1078_s14 = scalar_lea.vmem %s1312_s28, 512  ;;  %p1086_p2 = scmp.lt.s32.totalorder %s1312_s28, %s1312_s28 }
  0x1d   : > { %p1079_p9 = scmp.ne.s32.totalorder %s1312_s28, %s1078_s14  ;;  %p1087_p12 = scmp.lt.s32.totalorder %s1078_s14, %s1078_s14 }
  0x1f   : > { %p1081_p10 = pnand %p1079_p9, %p1067_p13  ;;  %p1088_p0 = por %p1087_p12, %p1086_p2 }
  0x21   : > { %p1082_p1 = pneg %p1081_p10 }
  0x23   : > { %p1089_p6 = pnand %p1088_p0, %p1082_p1 }
  0x25   : > { %1092 = shalt.err (!%p1089_p6)
}
  0x26   : > { %s1225_s15 = smov 128   ;;  %s1226_s16 = smov 8  }
  0x27   : > { %994 = dma.hbm_to_vmem [thread:$0]  (!%p1319_p11), %s1532_s1, 512, %s1312_s28, [#allocation6], %s1225_s15, %s1225_s15, %s1226_s16  }
  0x28   : > { %s1093_s7 = scalar_lea.hbm %s1534_s3, 512 }
  0x29   : > { %p1094_p2 = scmp.ne.s32.totalorder %s1534_s3, %s1093_s7  ;;  %p1100_p10 = scmp.lt.u32.totalorder %s1093_s7, %s1534_s3 }
  0x2b   : > { %p1096_p1 = pnand %p1094_p2, %p1067_p13 }
  0x2d   : > { %p1097_p6 = pneg %p1096_p1 }
  0x2f   : > { %p1102_p3 = pnand %p1100_p10, %p1097_p6 }
  0x31   : > { %1105 = shalt.err (!%p1102_p3)
}
  0x32   : > { %s1106_s28 = scalar_lea.vmem %s1323_s6, 512  ;;  %p1114_p12 = scmp.lt.s32.totalorder %s1323_s6, %s1323_s6 }
  0x33   : > { %p1107_p5 = scmp.ne.s32.totalorder %s1323_s6, %s1106_s28  ;;  %p1115_p0 = scmp.lt.s32.totalorder %s1106_s28, %s1106_s28 }
  0x35   : > { %p1109_p7 = pnand %p1107_p5, %p1067_p13  ;;  %p1116_p2 = por %p1115_p0, %p1114_p12 }
  0x37   : > { %p1110_p9 = pneg %p1109_p7 }
  0x39   : > { %p1117_p1 = pnand %p1116_p2, %p1110_p9 }
  0x3b   : > { %1120 = shalt.err (!%p1117_p1)
}
  0x3c   : > { %997 = dma.hbm_to_vmem [thread:$0]  (!%p1319_p11), %s1534_s3, 512, %s1323_s6, [#allocation6], %s1225_s15, %s1225_s15, %s1226_s16  }
  0x3d   : > { %s1378_s14 = sadd.s32 1, %s1221_s21   ;;  %s29_s29 = sadd.s32 1, %s1217_s20 }
  0x3e   : > { %s26_s17 = ssub.s32 %s1221_s21, %s1378_s14  ;;  %p36_p13 = scmp.ne.s32.totalorder %s1217_s20, %s1213_s19 }
  0x3f   : > { %p27_p6 = scmp.eq.s32.totalorder %s26_s17, 0  ;;  %p37_p10 = scmp.eq.s32.totalorder %s1221_s21, 0 }
  0x40   : > { %p1544_p3 = scmp.eq.s32.totalorder %s1289_s22, 1  ;;  %p1008_p7 = scmp.lt.s32.totalorder %s1221_s21, 2 }
  0x41   : > { %s1394_s27 = scalar_select %p27_p6, %s1217_s20, %s29_s29  }
  0x42   : > { %p1388_p5 = por %p1544_p3, %p36_p13  ;;  %p38_p9 = por %p37_p10, %p36_p13 }
  0x43   : > { %s208_s30 = sand.u32 1, %s1217_s20   ;;  %s887_s6 = sshll.u32 %s1221_s21, 7 }
  0x44   : > { %s1545_s23 = scalar_select %p1388_p5, 1, 0 }
  0x45   : > { %s886_s7 = sshll.u32 %s208_s30, 3  ;;  %s1401_s8 = scalar_lea.hbm %s1531_s0, %s887_s6 }
  0x46   : > { %s212_s9 = scalar_lea.vmem [#allocation2], %s886_s7  ;;  %p1405_p11 = pnand %p1008_p7, %p38_p9 }
  0x47   : > { %s219_s10 = sshll.u32 %s212_s9, 4  ;;  %s209_s28 = scalar_lea.sflag [#allocation3], %s208_s30  ;;  %s1403_s10 = int_to_ptr.vmem [resolvable:$true] %s219_s10 }
  0x48   : > { %s1121_s12 = scalar_lea.hbm %s1401_s8, 128  ;;  %p1123_p0 = pneg %p1405_p11 }
  0x49   : > { %p1122_p12 = scmp.ne.s32.totalorder %s1401_s8, %s1121_s12  ;;  %s1126_s17 = scalar_lea.hbm %s1531_s0, 256 }
  0x4a   : > { %p1127_p13 = scmp.lt.u32.totalorder %s1401_s8, %s1531_s0  ;;  %p1128_p6 = scmp.lt.u32.totalorder %s1126_s17, %s1121_s12 }
  0x4b   : > { %p1124_p2 = pnand %p1123_p0, %p1122_p12  ;;  %p1130_p3 = scmp.lt.u32.totalorder %s1121_s12, %s1401_s8 }
  0x4c   : > { %p1129_p10 = por %p1128_p6, %p1127_p13 }
  0x4d   : > { %p1125_p1 = pneg %p1124_p2 }
  0x4e   : > { %p1131_p7 = por %p1130_p3, %p1129_p10 }
  0x50   : > { %p1132_p9 = pnand %p1131_p7, %p1125_p1 }
  0x52   : > { %1135 = shalt.err (!%p1132_p9)
}
  0x53   : > { %s1136_s30 = scalar_lea.vmem %s1403_s10, 128  ;;  %s1227_s15 = smov [#allocation2]  }
  0x54   : > { %p1137_p12 = scmp.ne.s32.totalorder %s1403_s10, %s1136_s30  ;;  %s1141_s16 = sshll.u32 %s1227_s15, 4  ;;  %s1142_s16 = int_to_ptr.vmem [resolvable:$false] %s1141_s16 }
  0x55   : > { %s1143_s9 = scalar_lea.vmem %s1142_s16, 256  ;;  %p1144_p4 = scmp.lt.s32.totalorder %s1403_s10, %s1142_s16 }
  0x56   : > { %p1139_p2 = pnand %p1137_p12, %p1123_p0  ;;  %p1145_p13 = scmp.lt.s32.totalorder %s1143_s9, %s1136_s30 }
  0x58   : > { %p1140_p5 = pneg %p1139_p2  ;;  %p1146_p6 = por %p1145_p13, %p1144_p4 }
  0x5a   : > { %p1147_p10 = pnand %p1146_p6, %p1140_p5 }
  0x5c   : > { %1150 = shalt.err (!%p1147_p10)
}
  0x5d   : > { %1001 = dma.hbm_to_vmem [thread:$0]  (!%p1405_p11), %s1401_s8, 128, %s1403_s10, %s209_s28  }
  0x5e   : > { %228 = sbr.rel (%p1308_p8) target bundleno = 1749 (0x6d5), region = 40  ;;  %s1437_s12 = sand.u32 (!%p1308_p8), 1, %s1213_s19  }
  0x5f   : > { %s889_s13 = sshll.u32 (!%p1308_p8), %s1437_s12, 3  ;;  %s231_s29 = scalar_lea.sflag (!%p1308_p8), [#allocation3], %s1437_s12 }
  0x60   : > { %s234_s17 = scalar_lea.vmem (!%p1308_p8), [#allocation2], %s889_s13  ;;  %p1547_p4 = scmp.ne.s32.totalorder (!%p1308_p8), %s1540_s24, 0 }
  0x65   : > { %1196 = dma.done.wait (%p1547_p4), %s231_s29, 128  }
  0x66   : > { %1198 = vsyncadd (%p1547_p4), %s231_s29, 4294967168  ;;  %p1548_p5 = scmp.eq.s32.totalorder %s1289_s22, 0 }
  0x68   : > { %1200 = dma.done.wait (%p1548_p5), [#allocation6], 1024   ;;  %p1549_p8 = pmov %p1548_p5 }
  0x69   : > { %v1228_v0 = vmov 0.0|0.0   ;;  %vm1229_vm0 = vmmov 0   ;;  %v1230_v1 = vmov 0.0   ;;  %v270_v2 = vld [vmem:[#allocation5] sm:$0xff]  ;;  %v271_v3 = vld [vmem:[#allocation5 + $0x8] sm:$0xff]  ;;  %v272_v4 = vld [vmem:[#allocation5 + $0x10] sm:$0xff] }
  0x6a   : > { %1202 = vsyncadd (%p1549_p8), [#allocation6], 4294966272  ;;  %967 = vmatprep.subr.bf16.mxu0 %v1228_v0  ;;  %933 = vmatprep.mubr.msk.f32.mxu0 %vm1229_vm0, %v1230_v1  ;;  %v968_v5 = vpack.c.bf16 %v271_v3, %v270_v2  ;;  %v273_v6 = vld [vmem:[#allocation5 + $0x18] sm:$0xff]  ;;  %vm281_vm1 = vcmask 261120   ;;  %v893_v9 = vld [vmem:[%s1533_s2] ss:$0 sm:$0xff] }
  0x6b   : > { %936 = vmatprep.subr.mxu1 %v1230_v1  ;;  %938 = vmatprep.mubr.msk.f32.mxu1 %vm1229_vm0, %v1230_v1  ;;  %v971_v7 = vpack.c.bf16 %v273_v6, %v272_v4  ;;  %v269_v8 = vld [vmem:[%s234_s17] sm:$0xff]  ;;  %s1231_s8 = smov 64   ;;  %s1232_s10 = smov 96   ;;  %vm359_vm2 = vcmask 130048   ;;  %vm435_vm3 = vcmask 64512   ;;  %v693_v37 = vld [vmem:[#allocation7] sm:$0xff] }
  0x6c   : > { %969 = vmatpush3.bf16.msra.mxu0 %v968_v5  ;;  %s1233_s11 = smov 80   ;;  %s1234_s28 = smov 112   ;;  %v694_v38 = vld [vmem:[#allocation7 + $0x8] sm:$0xff]  ;;  %v695_v39 = vld [vmem:[#allocation7 + $0x10] sm:$0xff]  ;;  %v696_v41 = vld [vmem:[#allocation7 + $0x18] sm:$0xff] }
  0x6d   : > { %970 = vmatprep.subr.bf16.mxu0 %v1228_v0  ;;  %s1235_s7 = smov 48   ;;  %v974_v40 = vpack.c.bf16 %v694_v38, %v693_v37  ;;  %v977_v42 = vpack.c.bf16 %v696_v41, %v695_v39  ;;  %s1236_s6 = smov 16   ;;  %v901_v53 = vld [vmem:[%s1535_s4] ss:$0 sm:$0xff] }
  0x6e   : > { %s904_s16 = sshll.u32 %s1289_s22, 7  ;;  %s268_s9 = scalar_lea.vmem [#allocation8], %s889_s13 }
  0x6f   : > { %s792_s29 = sshll.u32 %s268_s9, 4  ;;  %s1486_s26 = scalar_lea.hbm %s1536_s5, %s904_s16  ;;  %s1488_s29 = int_to_ptr.vmem [resolvable:$true] %s792_s29 }
  0x70   : > { %972 = vmatpush3.bf16.msra.mxu0 %v971_v7  ;;  %s1151_s22 = scalar_lea.vmem %s1488_s29, 128  ;;  %p1550_p0 = scmp.ne.s32.totalorder %s1545_s23, 0 }
  0x71   : > { %973 = vmatprep.subr.bf16.mxu0 %v1228_v0  ;;  %p1152_p11 = scmp.ne.s32.totalorder %s1488_s29, %s1151_s22  ;;  %s1237_s13 = smov [#allocation8]  }
  0x73   : > { %934 = vmatmul.mubr.msk.f32.vlgmr.msra.gmra.mrb[0].mxu0 %vm281_vm1, %v269_v8  ;;  %p1153_p1 = pnand %p1152_p11, %p1550_p0 }
  0x74   : > { %964 = vmatprep.mubr.msk.f32.mxu0 %vm1229_vm0, %v1230_v1  ;;  %975 = vmatpush3.bf16.msra.mxu0 %v974_v40 }
  0x75   : > { %976 = vmatprep.subr.bf16.mxu0 %v1228_v0  ;;  %p1154_p3 = pneg %p1153_p1 }
  0x78   : > { %978 = vmatpush3.bf16.msra.mxu0 %v977_v42 }
 0x146   : > { %v351_v10 = vpop.f32.mrb[0].mxu0 }
 0x147   : > { %v352_v11 = vadd.f32 %v893_v9, %v351_v10  ;;  %v935_v12 = vpop.f32.mrb[1].mxu0 }
 0x149   : > { %445 = vrot.lane.b32.xlu1 %v352_v11, %s1231_s8  ;;  %357 = vrot.lane.b32.xlu0 %v352_v11, %s1232_s10  ;;  %v355_v13 = vmul.f32 0.25, %v352_v11  ;;  %s779_s8 = scalar_lea.sflag [#allocation4], %s1437_s12  ;;  %s1155_s10 = sshll.u32 %s1237_s13, 4  ;;  %s1156_s10 = int_to_ptr.vmem [resolvable:$false] %s1155_s10 }
 0x14a   : > { %p1158_p7 = scmp.lt.s32.totalorder %s1488_s29, %s1156_s10 }
 0x14d   : > { %525 = vrot.lane.b32.xlu1 %v352_v11, %s1233_s11  ;;  %s1157_s11 = scalar_lea.vmem %s1156_s10, 256 }
 0x14e   : > { %p1159_p9 = scmp.lt.s32.totalorder %s1157_s11, %s1151_s22 }
 0x150   : > { %p1160_p12 = por %p1159_p9, %p1158_p7 }
 0x151   : > { %523 = vrot.lane.b32.xlu1 %v355_v13, %s1234_s28 }
 0x152   : > { %p1161_p2 = pnand %p1160_p12, %p1154_p3 }
 0x1bb   : > { %v358_v14 = vpop.permute.xlu0 %357  ;;  %v446_v15 = vpop.permute.xlu1 %445 }
 0x1bc   : > { %937 = vmatpush3.xpose.msk.msra.mxu1 %vm359_vm2, %v358_v14 }
 0x1bd   : > { %941 = vmatprep.subr.mxu1 %v1230_v1 }
 0x1bf   : > { %939 = vmatmul.mubr.msk.f32.vlgmr.msra.gmra.mrb[0].mxu1 %vm359_vm2, %v355_v13  ;;  %v526_v22 = vpop.permute.xlu1 %525 }
 0x1c0   : > { %942 = vmatpush3.msra.mxu1 %v446_v15  ;;  %943 = vmatprep.mubr.msk.f32.mxu1 %vm1229_vm0, %v1230_v1 }
 0x1c1   : > { %946 = vmatprep.subr.mxu1 %v1230_v1 }
 0x1c3   : > { %v524_v24 = vpop.permute.xlu1 %523 }
 0x292   : > { %v431_v16 = vpop.f32.mrb[0].mxu1 }
 0x293   : > { %v940_v17 = vpop.f32.mrb[1].mxu1  ;;  %v436_v18 = vsel %vm435_vm3, %v431_v16, -inf }
 0x294   : > { %437 = vmax.xlane.f32.xlu0 %v436_v18 }
 0x2aa   : > { %610 = vrot.lane.b32.xlu0 %v352_v11, %s1235_s7 }
 0x321   : > { %v438_v19 = vpop.xlane.xlu0 %437 }
 0x322   : > { %v439_v20 = vsub.f32 %v431_v16, %v438_v19 }
 0x324   : > { %v440_v21 = vmul.f32 1.442695, %v439_v20 }
 0x325   : > { %v611_v25 = vpop.permute.xlu0 %610 }
 0x326   : > { %1057 = vpow2.f32 %v440_v21 }
 0x330   : > { %v1058_v23 = vpop.eup %1057 }
 0x331   : > { %944 = vmatmul.mubr.msk.f32.vlgmr.msra.gmra.mrb[2].mxu1 %vm435_vm3, %v1058_v23  ;;  %v442_v36 = vsel %vm435_vm3, %v1058_v23, 0.0 }
 0x332   : > { %947 = vmatpush3.xpose.msk.msra.mxu1 %vm359_vm2, %v526_v22  ;;  %948 = vmatprep.mubr.msk.f32.mxu1 %vm1229_vm0, %v1230_v1 }
 0x333   : > { %951 = vmatprep.subr.mxu1 %v1230_v1 }
 0x335   : > { %949 = vmatmul.mubr.msk.f32.vlgmr.msra.gmra.mrb[4].mxu1 %vm359_vm2, %v524_v24 }
 0x336   : > { %952 = vmatpush3.msra.mxu1 %v611_v25  ;;  %953 = vmatprep.mubr.msk.f32.mxu1 %vm1229_vm0, %v1230_v1 }
 0x404   : > { %v517_v26 = vpop.f32.mrb[2].mxu1 }
 0x405   : > { %v945_v27 = vpop.f32.mrb[3].mxu1 }
 0x408   : > { %v597_v28 = vpop.f32.mrb[4].mxu1 }
 0x409   : > { %v950_v29 = vpop.f32.mrb[5].mxu1  ;;  %v601_v30 = vsel %vm435_vm3, %v597_v28, -inf }
 0x40a   : > { %602 = vmax.xlane.f32.xlu1 %v601_v30 }
 0x497   : > { %v603_v31 = vpop.xlane.xlu1 %602 }
 0x498   : > { %v604_v32 = vsub.f32 %v597_v28, %v603_v31 }
 0x49a   : > { %v605_v33 = vmul.f32 1.442695, %v604_v32 }
 0x49c   : > { %1059 = vpow2.f32 %v605_v33 }
 0x4a6   : > { %v1060_v34 = vpop.eup %1059 }
 0x4a7   : > { %954 = vmatmul.mubr.msk.f32.vlgmr.msra.gmra.mrb[6].mxu1 %vm435_vm3, %v1060_v34  ;;  %v607_v35 = vsel %vm435_vm3, %v1060_v34, 0.0 }
 0x4a8   : > { %608 = vadd.xlane.f32.xlu1 %v607_v35 }
 0x4ac   : > { %443 = vadd.xlane.f32.xlu1 %v442_v36 }
 0x535   : > { %v609_v43 = vpop.xlane.xlu1 %608 }
 0x536   : > { %1061 = vrcp.f32 %v609_v43 }
 0x539   : > { %v444_v48 = vpop.xlane.xlu1 %443 }
 0x53a   : > { %1063 = vrcp.f32 %v444_v48 }
 0x540   : > { %v1062_v44 = vpop.eup %1061 }
 0x544   : > { %v1064_v49 = vpop.eup %1063 }
 0x545   : > { %v522_v50 = vmul.f32 %v1064_v49, %v517_v26 }
 0x57a   : > { %v682_v45 = vpop.f32.mrb[6].mxu1 }
 0x57b   : > { %v687_v46 = vmul.f32 %v1062_v44, %v682_v45  ;;  %v955_v47 = vpop.f32.mrb[7].mxu1 }
 0x57d   : > { %689 = vrot.lane.b32.xlu1 %v687_v46, %s1236_s6 }
 0x5ef   : > { %v690_v51 = vpop.permute.xlu1 %689 }
 0x5f0   : > { %v692_v52 = vsel %vm359_vm2, %v522_v50, %v690_v51 }
 0x5f1   : > { %965 = vmatmul.mubr.msk.f32.vlgmr.msra.gmra.mrb[2].mxu0 %vm281_vm1, %v692_v52 }
 0x6c4   : > { %v773_v54 = vpop.f32.mrb[2].mxu0 }
 0x6c5   : > { %v774_v55 = vadd.f32 %v901_v53, %v773_v54  ;;  %v966_v56 = vpop.f32.mrb[3].mxu0 }
 0x6c7   : > { %777 = vst.msk [vmem:[%s268_s9] sm:$0xff] %vm281_vm1, %v774_v55 }
 0x6c8   : > { %1164 = shalt.err (!%p1161_p2)
}
 0x6c9   : > { %s1165_s12 = scalar_lea.hbm %s1486_s26, 128  ;;  %s1169_s6 = scalar_lea.hbm %s1536_s5, 256 }
 0x6ca   : > { %p1166_p13 = scmp.ne.s32.totalorder %s1486_s26, %s1165_s12  ;;  %p1170_p4 = scmp.lt.u32.totalorder %s1486_s26, %s1536_s5 }
 0x6cb   : > { %p1171_p5 = scmp.lt.u32.totalorder %s1169_s6, %s1165_s12  ;;  %p1173_p11 = scmp.lt.u32.totalorder %s1165_s12, %s1486_s26 }
 0x6cc   : > { %p1167_p6 = pnand %p1166_p13, %p1550_p0 }
 0x6cd   : > { %p1172_p8 = por %p1171_p5, %p1170_p4 }
 0x6ce   : > { %p1168_p10 = pneg %p1167_p6 }
 0x6cf   : > { %p1174_p1 = por %p1173_p11, %p1172_p8 }
 0x6d1   : > { %p1175_p3 = pnand %p1174_p1, %p1168_p10 }
 0x6d3   : > { %1178 = shalt.err (!%p1175_p3)
}
 0x6d4   : > { %989 = dma.vmem_to_hbm [thread:$0]  (%p1550_p0), %s1488_s29, 128, %s1486_s26, %s779_s8  }
 0x6d5 PF: > { %s804_s16 = sand.u32 1, %s1209_s18   ;;  %p1551_p7 = scmp.ne.s32.totalorder %s1541_s25, 0 }
 0x6d6   : > { %p1552_p9 = scmp.ge.s32.totalorder %s1221_s21, 2  ;;  %s805_s9 = scalar_lea.sflag [#allocation4], %s804_s16 }
 0x6d8   : > { %p1003_p12 = pnand %p1552_p9, %p1551_p7 }
 0x6da   : > { %1204 = dma.done.wait (!%p1003_p12), %s805_s9, 128  }
 0x6db   : > { %1206 = vsyncadd (!%p1003_p12), %s805_s9, 4294967168  ;;  %p19_p2 = scmp.ge.s32.totalorder %s1378_s14, 4   ;;  %s1553_s18 = smov %s1213_s19 }
 0x6dc   : > { %s1554_s19 = smov %s1217_s20  ;;  %s1555_s20 = smov %s1394_s27 }
 0x6dd   : > { %s1556_s21 = smov %s1378_s14  ;;  %21 = sbr.rel (!%p19_p2) target bundleno = 6 (0x6), region = 93 }
 0x6e4   :  { %810 = vsyncpa [#allocation3], 1 }
 0x6e5   :  { %812 = vsyncpa [#allocation3 + $0x1], 1 }
 0x6e6   :  { %813 = vsyncpa [#allocation6], 1 }
 0x6e7   :  { %814 = vsyncpa [#allocation4], 1 }
 0x6e8   :  { %816 = vsyncpa [#allocation4 + $0x1], 1 }

</bundles_post_ra>
